<compile_context>
chip_gen: v7x
topology: tpu7x:2x2x1
jax: 0.10.0
libtpu: 0.0.40
codegen_flags: <defaults>
</compile_context>

<pallas_src>
import jax
import jax.numpy as jnp
from jax.experimental import pallas as pl
from jax.experimental.pallas import tpu as pltpu


_MAX_IMAGES_PER_STEP = 32           # bounds the static unroll / compile time
_TARGET_STEP_BYTES = 4 * 1024 * 1024        # ~4 MiB (in+out) per grid step
_BLOCK_VMEM_BUDGET = 10 * 1024 * 1024       # per-step blocks, pre-double-buffer


# --------------------------------------------------------------------------
# Kernels
# --------------------------------------------------------------------------
def _kernel_per_image(xp_ref, w_ref, b_ref, o_ref):
    # xp_ref: (ips, K, Mp) bf16 patches   (one image per leading index)
    # w_ref : (E, K)       bf16 flattened conv weight (grid-invariant)
    # b_ref : (E, 1)       f32  bias column           (grid-invariant)
    # o_ref : (ips, E, Mp) out  NCHW-flattened conv output
    ips, e, mp = o_ref.shape
    w = w_ref[...]
    b_full = jnp.broadcast_to(b_ref[...], (e, mp))   # hoisted: broadcast once
    for t in range(ips):                             # small static unroll
        acc = jnp.dot(w, xp_ref[t], preferred_element_type=jnp.float32)
        o_ref[t] = (acc + b_full).astype(o_ref.dtype)


def _kernel_wide(xp_ref, w_ref, b_ref, o_ref):
    # xp_ref: (K, ips*Mp) bf16 patches, columns ordered (image, hp, wp)
    # One wide GEMM per grid step -> full MXU column occupancy (v5e win),
    # then lane-aligned per-image slices (Mp % 128 == 0 on this path).
    ips, e, mp = o_ref.shape
    acc = jnp.dot(w_ref[...], xp_ref[...], preferred_element_type=jnp.float32)
    acc = (acc + b_ref[...]).astype(o_ref.dtype)     # bias broadcast once
    for t in range(ips):
        o_ref[t] = acc[:, t * mp:(t + 1) * mp]


# --------------------------------------------------------------------------
# Tiling heuristics
# --------------------------------------------------------------------------
def _choose_images_per_step(bt, k, mp, e, out_itemsize):
    """Pick images-per-step as a divisor of bt.

    Targets ~_TARGET_STEP_BYTES of (in+out) HBM traffic per grid step to
    amortize the ~0.35us per-step overhead, keeps >= 4 grid steps when bt
    allows (so each v7x TensorCore gets >= 2 steps -> DMA overlap), prefers
    even step counts (balanced across the two v7x cores), and stays inside a
    VMEM block budget compatible with v7x's 64 MiB after double-buffering.
    """
    in_per_img = k * mp * 2                       # bf16 patches
    out_per_img = e * mp * out_itemsize
    per_img = in_per_img + out_per_img

    if bt >= 8:
        min_steps = 4
    elif bt >= 2:
        min_steps = 2
    else:
        min_steps = 1

    divisors = [d for d in range(1, bt + 1) if bt % d == 0]
    feasible = [d for d in divisors
                if bt // d >= min_steps
                and d * per_img <= _BLOCK_VMEM_BUDGET
                and d <= _MAX_IMAGES_PER_STEP]
    if not feasible:
        return 1

    reaching = [d for d in feasible if d * per_img >= _TARGET_STEP_BYTES]
    if reaching:
        even = [d for d in reaching if (bt // d) % 2 == 0]
        return min(even) if even else min(reaching)
    even = [d for d in feasible if (bt // d) % 2 == 0]
    return max(even) if even else max(feasible)


def _vmem_limit_bytes(block_bytes, weight_bytes):
    """Generation-aware scoped-VMEM limit with headroom (never all of v7x's 64 MiB)."""
    try:
        cap = int(pltpu.get_tpu_info().vmem_capacity_bytes)
    except Exception:  # pragma: no cover - conservative fallback
        cap = 64 * 1024 * 1024                    # smallest physical VMEM (v7x)
    need = 2 * block_bytes + 2 * weight_bytes + (4 << 20)  # dbl-buffer + scratch slack
    return int(min(int(0.75 * cap), max(32 * 1024 * 1024, need)))


# --------------------------------------------------------------------------
# pallas_call wrapper
# --------------------------------------------------------------------------
def patch_embed_matmul(xp, w_mat, bias_col, *, bt, mp, out_dtype=jnp.float32):
    """out[bt] = w_mat @ patches_T[bt] + bias  ->  (bt, E, Mp).

    xp is either (bt, K, Mp) [per-image layout] or (K, bt*Mp) [wide layout,
    used when Mp % 128 == 0].  w_mat: (E, K) bf16, bias_col: (E, 1) f32.
    """
    e, k = w_mat.shape
    out_itemsize = jnp.dtype(out_dtype).itemsize
    wide = (xp.ndim == 2)

    ips = _choose_images_per_step(bt, k, mp, e, out_itemsize)
    grid = (bt // ips,)                 # ips | bt  ->  no padded tail step

    block_bytes = ips * (k * mp * 2 + e * mp * out_itemsize)
    weight_bytes = e * k * 2 + e * 4
    vmem_limit = _vmem_limit_bytes(block_bytes, weight_bytes)

    cost = pl.CostEstimate(
        flops=2 * bt * e * k * mp,
        transcendentals=0,
        bytes_accessed=(bt * k * mp * 2              # bf16 patches in
                        + weight_bytes               # resident weight + bias
                        + bt * e * mp * out_itemsize),
    )

    if wide:
        kernel = _kernel_wide
        xp_spec = pl.BlockSpec((k, ips * mp), lambda i: (0, i))
    else:
        kernel = _kernel_per_image
        xp_spec = pl.BlockSpec((ips, k, mp), lambda i: (i, 0, 0))

    return pl.pallas_call(
        kernel,
        out_shape=jax.ShapeDtypeStruct((bt, e, mp), out_dtype),
        grid_spec=pltpu.PrefetchScalarGridSpec(
            num_scalar_prefetch=0,
            grid=grid,
            in_specs=[
                xp_spec,
                # Grid-invariant operands: constant index_map -> fetched once
                # and kept resident for the whole grid (no per-step re-DMA).
                pl.BlockSpec((e, k), lambda i: (0, 0)),
                pl.BlockSpec((e, 1), lambda i: (0, 0)),
            ],
            out_specs=pl.BlockSpec((ips, e, mp), lambda i: (i, 0, 0)),
        ),
        compiler_params=pltpu.CompilerParams(
            dimension_semantics=("parallel",),
            vmem_limit_bytes=vmem_limit,
        ),
        cost_estimate=cost,
    )(xp, w_mat, bias_col)


# --------------------------------------------------------------------------
# Module
# --------------------------------------------------------------------------
class PatchEmbedTimeSeries:
    """JAX/Pallas equivalent of the PyTorch PatchEmbedTimeSeries module."""

    def __init__(self, patch_size, in_chans, embed_dim, time_span=3, *,
                 key, out_dtype=jnp.float32):
        assert in_chans % time_span == 0
        self.patch_size = patch_size
        self.time_span = time_span
        self.conv_input_channel = in_chans // time_span
        self.embed_dim = embed_dim
        self.out_dtype = out_dtype   # f32 matches PyTorch; bf16 = perf knob

        kw, kb = jax.random.split(key)
        # Deterministic synthetic init (PyTorch default Conv2d init is not
        # reproduced exactly; only shapes/semantics matter here).
        self.weight = (
            jax.random.normal(
                kw,
                (embed_dim, self.conv_input_channel, patch_size, patch_size),
                dtype=jnp.float32,
            )
            * 0.02
        )
        self.bias = jax.random.normal(kb, (embed_dim,), dtype=jnp.float32) * 0.02

        # Precomputed GEMM operands (once, not per forward call):
        #   w_mat : (E, K) bf16, K flattened in (c, i, j) order.
        #   bias  : (E, 1) f32 column, broadcast along the Hp*Wp lane dim.
        k_dim = self.conv_input_channel * patch_size * patch_size
        self.w_mat = self.weight.reshape(embed_dim, k_dim).astype(jnp.bfloat16)
        self.bias_col = self.bias.reshape(embed_dim, 1).astype(jnp.float32)

    def __call__(self, x):
        # x: (B, C, H, W) NCHW, float32
        B, C, H, W = x.shape
        T = self.time_span
        P = self.patch_size
        Cin = self.conv_input_channel
        E = self.embed_dim
        assert C % T == 0, (
            "Total channels must be divisible by the number of time steps (T)."
        )
        assert C // T == Cin
        assert H % P == 0 and W % P == 0

        BT = B * T
        Hp, Wp = H // P, W // P
        K = Cin * P * P
        Mp = Hp * Wp

        # (B, C, H, W) -> (B*T, Cin, H, W)   (free reshape)
        x = x.reshape(BT, Cin, H, W)
        xp6 = x.reshape(BT, Cin, Hp, P, Wp, P)

        # Patch extraction to the GEMM operand layout.  The f32->bf16 cast is
        # folded into this single XLA pass.
        # TODO(synk): fuse this rearrangement into the Pallas kernel via
        # sublane-strided DMA gathers once robust across generations.
        if Mp % 128 == 0:
            # Wide layout: (Cin, P, P, BT, Hp, Wp) -> (K, BT*Mp); one wide
            # GEMM per grid step with lane-aligned per-image output slices.
            xp = jnp.transpose(xp6, (1, 3, 5, 0, 2, 4))
            xp = xp.reshape(K, BT * Mp).astype(jnp.bfloat16)
        else:
            # Per-image layout: (BT, Cin, P, P, Hp, Wp) -> (BT, K, Mp).
            xp = jnp.transpose(xp6, (0, 1, 3, 5, 2, 4))
            xp = xp.reshape(BT, K, Mp).astype(jnp.bfloat16)

        out = patch_embed_matmul(
            xp, self.w_mat, self.bias_col, bt=BT, mp=Mp, out_dtype=self.out_dtype
        )  # (BT, E, Mp)

        # NCHW conv output, no transpose needed (free reshape only).
        return out.reshape(BT, E, Hp, Wp)


# --------------------------------------------------------------------------
# Reference + demo
# --------------------------------------------------------------------------
def _reference_conv(x, weight, bias, patch_size, time_span):
    """Pure-JAX f32 reference using lax.conv for correctness checking."""
    B, C, H, W = x.shape
    Cin = C // time_span
    x = x.reshape(B * time_span, Cin, H, W)
    out = jax.lax.conv_general_dilated(
        x,
        weight,
        window_strides=(patch_size, patch_size),
        padding="VALID",
        dimension_numbers=("NCHW", "OIHW", "NCHW"),
    )
    return out + bias.reshape(1, -1, 1, 1)


if __name__ == "__main__":
    key = jax.random.PRNGKey(0)
    k_x, k_x2, k_params = jax.random.split(key, 3)

    B, time_span, cin = 2, 3, 2
    in_chans = time_span * cin            # 6
    patch_size = 4
    embed_dim = 32

    module = PatchEmbedTimeSeries(
        patch_size=patch_size,
        in_chans=in_chans,
        embed_dim=embed_dim,
        time_span=time_span,
        key=k_params,
    )
    fwd = jax.jit(module.__call__)

    # Case 1: small square images (Mp = 16)  -> per-image kernel path.
    H = W = 16
    x = jax.random.normal(k_x, (B, in_chans, H, W), dtype=jnp.float32)
    out = jax.block_until_ready(fwd(x))
    ref = jax.block_until_ready(
        _reference_conv(x, module.weight, module.bias, patch_size, time_span))
    assert out.shape == (B * time_span, embed_dim, H // patch_size, W // patch_size)
    assert out.dtype == jnp.float32
    assert jnp.allclose(out, ref, atol=2e-2, rtol=2e-2), "mismatch vs reference (case 1)"

    # Case 2: Mp = 128 (Hp=16, Wp=8)  -> wide lane-aligned GEMM path.
    H2, W2 = 64, 32
    x2 = jax.random.normal(k_x2, (B, in_chans, H2, W2), dtype=jnp.float32)
    out2 = jax.block_until_ready(fwd(x2))
    ref2 = jax.block_until_ready(
        _reference_conv(x2, module.weight, module.bias, patch_size, time_span))
    assert out2.shape == (B * time_span, embed_dim, H2 // patch_size, W2 // patch_size)
    assert out2.dtype == jnp.float32
    assert jnp.allclose(out2, ref2, atol=2e-2, rtol=2e-2), "mismatch vs reference (case 2)"

    print("KERNEL_OK")
</pallas_src>

<mosaic_0001>
module attributes {stable_mosaic.version = 11 : i64} {
  func.func @_kernel_per_image(%arg0: i32, %arg1: memref<3x32x16xbf16, #tpu.memory_space<vmem>>, %arg2: memref<32x32xbf16, #tpu.memory_space<vmem>>, %arg3: memref<32x1xf32, #tpu.memory_space<vmem>>, %arg4: memref<3x32x16xf32, #tpu.memory_space<vmem>>) attributes {dimension_semantics = [#tpu.dimension_semantics<parallel>], iteration_bounds = array<i64: 2>, scalar_prefetch = 0 : i64, scratch_operands = 0 : i64, tpu.core_type = #tpu.core_type<tc>, window_params = [{transform_indices = @transform_0, window_bounds = array<i64: 3, 32, 16>}, {pipeline_mode = #tpu.pipeline_mode<synchronous>, transform_indices = @transform_1, window_bounds = array<i64: 32, 32>}, {pipeline_mode = #tpu.pipeline_mode<synchronous>, transform_indices = @transform_2, window_bounds = array<i64: 32, 1>}, {transform_indices = @transform_3, window_bounds = array<i64: 3, 32, 16>}]} {
    %c0 = arith.constant 0 : index
    %c0_0 = arith.constant 0 : index
    %0 = vector.load %arg2[%c0, %c0_0] : memref<32x32xbf16, #tpu.memory_space<vmem>>, vector<32x32xbf16>
    %c0_1 = arith.constant 0 : index
    %c0_2 = arith.constant 0 : index
    %1 = vector.load %arg3[%c0_1, %c0_2] : memref<32x1xf32, #tpu.memory_space<vmem>>, vector<32x1xf32>
    %2 = vector.shape_cast %1 : vector<32x1xf32> to vector<32x1xf32>
    %3 = vector.broadcast %2 : vector<32x1xf32> to vector<32x16xf32>
    %c0_3 = arith.constant 0 : index
    %c0_4 = arith.constant 0 : index
    %c0_5 = arith.constant 0 : index
    %4 = vector.load %arg1[%c0_3, %c0_4, %c0_5] : memref<3x32x16xbf16, #tpu.memory_space<vmem>>, vector<1x32x16xbf16>
    %5 = vector.shape_cast %4 : vector<1x32x16xbf16> to vector<32x16xbf16>
    %cst = arith.constant dense<0.000000e+00> : vector<32x16xf32>
    %6 = tpu.matmul %0, %5, %cst {dimension_numbers = #tpu.dot_dimension_numbers<[1], [0], [0], [1], [0, 0, 1, 1], [], []>} : vector<32x32xbf16>, vector<32x16xbf16>, vector<32x16xf32> -> vector<32x16xf32>
    %7 = arith.addf %6, %3 : vector<32x16xf32>
    %c0_6 = arith.constant 0 : index
    %c0_7 = arith.constant 0 : index
    %c0_8 = arith.constant 0 : index
    %8 = vector.load %arg4[%c0_6, %c0_7, %c0_8] : memref<3x32x16xf32, #tpu.memory_space<vmem>>, vector<1x32x16xf32>
    %9 = vector.shape_cast %8 : vector<1x32x16xf32> to vector<32x16xf32>
    %10 = vector.shape_cast %7 : vector<32x16xf32> to vector<1x32x16xf32>
    tpu.vector_store %arg4[%c0_6, %c0_7, %c0_8], %10 {strides = array<i32>} : memref<3x32x16xf32, #tpu.memory_space<vmem>>, vector<1x32x16xf32>,
    %c1 = arith.constant 1 : index
    %c0_9 = arith.constant 0 : index
    %c0_10 = arith.constant 0 : index
    %11 = vector.load %arg1[%c1, %c0_9, %c0_10] : memref<3x32x16xbf16, #tpu.memory_space<vmem>>, vector<1x32x16xbf16>
    %12 = vector.shape_cast %11 : vector<1x32x16xbf16> to vector<32x16xbf16>
    %cst_11 = arith.constant dense<0.000000e+00> : vector<32x16xf32>
    %13 = tpu.matmul %0, %12, %cst_11 {dimension_numbers = #tpu.dot_dimension_numbers<[1], [0], [0], [1], [0, 0, 1, 1], [], []>} : vector<32x32xbf16>, vector<32x16xbf16>, vector<32x16xf32> -> vector<32x16xf32>
    %14 = arith.addf %13, %3 : vector<32x16xf32>
    %c1_12 = arith.constant 1 : index
    %c0_13 = arith.constant 0 : index
    %c0_14 = arith.constant 0 : index
    %15 = vector.load %arg4[%c1_12, %c0_13, %c0_14] : memref<3x32x16xf32, #tpu.memory_space<vmem>>, vector<1x32x16xf32>
    %16 = vector.shape_cast %15 : vector<1x32x16xf32> to vector<32x16xf32>
    %17 = vector.shape_cast %14 : vector<32x16xf32> to vector<1x32x16xf32>
    tpu.vector_store %arg4[%c1_12, %c0_13, %c0_14], %17 {strides = array<i32>} : memref<3x32x16xf32, #tpu.memory_space<vmem>>, vector<1x32x16xf32>,
    %c2 = arith.constant 2 : index
    %c0_15 = arith.constant 0 : index
    %c0_16 = arith.constant 0 : index
    %18 = vector.load %arg1[%c2, %c0_15, %c0_16] : memref<3x32x16xbf16, #tpu.memory_space<vmem>>, vector<1x32x16xbf16>
    %19 = vector.shape_cast %18 : vector<1x32x16xbf16> to vector<32x16xbf16>
    %cst_17 = arith.constant dense<0.000000e+00> : vector<32x16xf32>
    %20 = tpu.matmul %0, %19, %cst_17 {dimension_numbers = #tpu.dot_dimension_numbers<[1], [0], [0], [1], [0, 0, 1, 1], [], []>} : vector<32x32xbf16>, vector<32x16xbf16>, vector<32x16xf32> -> vector<32x16xf32>
    %21 = arith.addf %20, %3 : vector<32x16xf32>
    %c2_18 = arith.constant 2 : index
    %c0_19 = arith.constant 0 : index
    %c0_20 = arith.constant 0 : index
    %22 = vector.load %arg4[%c2_18, %c0_19, %c0_20] : memref<3x32x16xf32, #tpu.memory_space<vmem>>, vector<1x32x16xf32>
    %23 = vector.shape_cast %22 : vector<1x32x16xf32> to vector<32x16xf32>
    %24 = vector.shape_cast %21 : vector<32x16xf32> to vector<1x32x16xf32>
    tpu.vector_store %arg4[%c2_18, %c0_19, %c0_20], %24 {strides = array<i32>} : memref<3x32x16xf32, #tpu.memory_space<vmem>>, vector<1x32x16xf32>,
    return
  }
  func.func @transform_0(%arg0: i32) -> (i32, i32, i32) {
    %c0_i32 = arith.constant 0 : i32
    %c0_i32_0 = arith.constant 0 : i32
    %c0_i32_1 = arith.constant 0 : i32
    return %arg0, %c0_i32, %c0_i32_0 : i32, i32, i32
  }
  func.func @transform_1(%arg0: i32) -> (i32, i32) {
    %c0_i32 = arith.constant 0 : i32
    %c0_i32_0 = arith.constant 0 : i32
    %c0_i32_1 = arith.constant 0 : i32
    return %c0_i32, %c0_i32_0 : i32, i32
  }
  func.func @transform_2(%arg0: i32) -> (i32, i32) {
    %c0_i32 = arith.constant 0 : i32
    %c0_i32_0 = arith.constant 0 : i32
    %c0_i32_1 = arith.constant 0 : i32
    return %c0_i32, %c0_i32_0 : i32, i32
  }
  func.func @transform_3(%arg0: i32) -> (i32, i32, i32) {
    %c0_i32 = arith.constant 0 : i32
    %c0_i32_0 = arith.constant 0 : i32
    %c0_i32_1 = arith.constant 0 : i32
    return %arg0, %c0_i32, %c0_i32_0 : i32, i32, i32
  }
}

</mosaic_0001>

<bundles_post_ra>
// kernel: a_call__.1
= control target key start
LH: loop header
LB: loop body
LE: loop exit
PB: predicated region body
PF: predicated region fallthrough
CT: control target
= control target key end

     0   :  { %s622_s12 = smov 0   ;;  %s693_s0 = inlined_call_operand.vmem [shape: bf16[6,32,16], index: 0, kind: input, shape index: {}]   ;;  %s694_s1 = inlined_call_operand.vmem [shape: bf16[32,32], index: 1, kind: input, shape index: {}]   ;;  %s695_s2 = inlined_call_operand.vmem [shape: f32[32,1], index: 2, kind: input, shape index: {}]   ;;  %s696_s3 = inlined_call_operand.vmem [shape: f32[6,32,16], index: 3, kind: output, shape index: {}]  }
   0x1 LB: > { %s495_s13 = sadd.s32 4294967295, %s599_s12   ;;  %p499_p0 = scmp.ge.s32.totalorder %s599_s12, 1  ;;  %s599_s12 = sphi %s622_s12, %s13_s12  }
   0x2   : > { %p139_p1 = scmp.lt.s32.totalorder %s599_s12, 3 }
   0x4   : > { %p140_p2 = pnand %p499_p0, %p139_p1 }
   0x5   : > { %s165_s14 = smul.u32 (!%p140_p2), 3, %s495_s13  ;;  %v588_v0 = vld [vmem:[%s694_s1] sm:$0xff] (!%p140_p2)   ;;  %vm234_vm0 = vcmask (!%p140_p2), 261120   ;;  %v186_v1 = vld [vmem:[%s695_s2 + $0x10] sm:$0xff] (!%p140_p2)  ;;  %v601_v3 = vmov (!%p140_p2), 0   ;;  %v187_v4 = vld [vmem:[%s695_s2 + $0x18] sm:$0xff] (!%p140_p2) }
   0x6   : > { %143 = sbr.rel (%p140_p2) target bundleno = 251 (0xfb), region = 32  ;;  %554 = vmatprep.mubr.msk.bf16.mxu0 (!%p140_p2), %vm234_vm0, %v588_v0  ;;  %562 = vmatprep.mubr.msk.bf16.mxu1 (!%p140_p2), %vm234_vm0, %v588_v0  ;;  %v184_v2 = vld [vmem:[%s695_s2] sm:$0xff] (!%p140_p2)  ;;  %v185_v5 = vld [vmem:[%s695_s2 + $0x8] sm:$0xff] (!%p140_p2)  ;;  %vm290_vm1 = vcmask (!%p140_p2), 130048  }
   0x7   : > { %p166_p3 = scmp.lt.s32.totalorder (!%p140_p2), %s165_s14, 5  ;;  %584 = vset.pattern.permute.xlu1 (!%p140_p2), %v601_v3  ;;  %583 = vset.pattern.permute.xlu0 (!%p140_p2), %v601_v3  ;;  %v589_v11 = vld [vmem:[%s694_s1 + $0x8] sm:$0xff] (!%p140_p2)  }
   0x8   : > { %200 = vperm.xlu1 (!%p140_p2), %584, %v186_v1   ;;  %190 = vperm.xlu0 (!%p140_p2), %583, %v184_v2  }
   0xc   : > { %205 = vperm.xlu1 (!%p140_p2), %584, %v187_v4   ;;  %195 = vperm.xlu0 (!%p140_p2), %583, %v185_v5  }
   0xd   : > { %s698_s14 = smov (!%p166_p3, %s165_s14), 5 }
   0xe   : > { %s536_s25 = sshll.u32 %s698_s14, 4  ;;  %s537_s4 = sshll.u32 %s698_s14, 5 }
   0xf   : > { %s170_s28 = scalar_lea.vmem %s693_s0, %s536_s25  ;;  %s664_s7 = scalar_lea.vmem %s696_s3, %s537_s4 }
  0x10   : > { %v585_v6 = vld [vmem:[%s170_s28] sm:$0xff]   ;;  %v586_v7 = vld [vmem:[%s170_s28 + $0x8] sm:$0xff]   ;;  %v587_v8 = vld [vmem:[%s170_s28 + $0x10] sm:$0xff]  }
  0x11   : > { %550 = vmatprep.subr.bf16.mxu0 %v585_v6  ;;  %v590_v9 = vld [vmem:[%s170_s28 + $0x20] sm:$0xff]   ;;  %558 = vmatprep.subr.bf16.mxu1 %v587_v8  ;;  %v591_v10 = vld [vmem:[%s170_s28 + $0x18] sm:$0xff]   ;;  %v592_v12 = vld [vmem:[%s170_s28 + $0x28] sm:$0xff]  }
  0x12   : > { %551 = vmatpush3.bf16.msra.mxu0 %v585_v6  ;;  %559 = vmatpush3.bf16.msra.mxu1 %v587_v8 }
  0x13   : > { %552 = vmatprep.subr.bf16.mxu0 %v586_v7  ;;  %560 = vmatprep.subr.bf16.mxu1 %v591_v10 }
  0x16   : > { %553 = vmatpush3.bf16.msra.mxu0 %v586_v7  ;;  %561 = vmatpush3.bf16.msra.mxu1 %v591_v10 }
  0x17   : > { %566 = vmatprep.subr.bf16.mxu0 %v590_v9 }
  0x19   : > { %555 = vmatmul.mubr.msk.bf16.vlgmr.msra.gmra.mrb[0].mxu0 %vm234_vm0, %v589_v11  ;;  %563 = vmatmul.mubr.msk.bf16.vlgmr.msra.gmra.mrb[0].mxu1 %vm234_vm0, %v589_v11 }
  0x1a   : > { %567 = vmatpush3.bf16.msra.mxu0 %v590_v9  ;;  %570 = vmatprep.mubr.msk.bf16.mxu0 %vm234_vm0, %v588_v0 }
  0x1b   : > { %568 = vmatprep.subr.bf16.mxu0 %v592_v12 }
  0x1e   : > { %569 = vmatpush3.bf16.msra.mxu0 %v592_v12 }
  0x21   : > { %571 = vmatmul.mubr.msk.bf16.vlgmr.msra.gmra.mrb[4].mxu0 %vm234_vm0, %v589_v11 }
  0x87   : > { %v201_v13 = vpop.permute.xlu1 %200  ;;  %v191_v14 = vpop.permute.xlu0 %190 }
  0x8b   : > { %v206_v16 = vpop.permute.xlu1 %205  ;;  %v196_v19 = vpop.permute.xlu0 %195 }
  0xec   : > { %v556_v15 = vpop.f32.mrb[0].mxu0  ;;  %v564_v22 = vpop.f32.mrb[0].mxu1 }
  0xed   : > { %v284_v17 = vadd.f32 %v556_v15, %v201_v13  ;;  %v275_v18 = vpop.f32.mrb[1].mxu0  ;;  %v355_v25 = vadd.f32 %v564_v22, %v201_v13  ;;  %v346_v26 = vpop.f32.mrb[1].mxu1 }
  0xee   : > { %v276_v20 = vadd.f32 %v275_v18, %v191_v14  ;;  %v557_v21 = vpop.f32.mrb[2].mxu0  ;;  %v347_v28 = vadd.f32 %v346_v26, %v191_v14  ;;  %v565_v29 = vpop.f32.mrb[2].mxu1 }
  0xef   : > { %293 = vst.msk [vmem:[%s664_s7 + $0x10] sm:$0xff] %vm290_vm1, %v284_v17  ;;  %v287_v23 = vadd.f32 %v557_v21, %v206_v16  ;;  %v278_v24 = vpop.f32.mrb[3].mxu0  ;;  %520 = vst.msk [vmem:[%s664_s7 + $0x30] sm:$0xff] %vm290_vm1, %v355_v25  ;;  %v358_v30 = vadd.f32 %v565_v29, %v206_v16  ;;  %v349_v31 = vpop.f32.mrb[3].mxu1 }
  0xf0   : > { %291 = vst.msk [vmem:[%s664_s7] sm:$0xff] %vm290_vm1, %v276_v20  ;;  %v279_v27 = vadd.f32 %v278_v24, %v196_v19  ;;  %518 = vst.msk [vmem:[%s664_s7 + $0x20] sm:$0xff] %vm290_vm1, %v347_v28  ;;  %v350_v32 = vadd.f32 %v349_v31, %v196_v19 }
  0xf1   : > { %294 = vst.msk [vmem:[%s664_s7 + $0x18] sm:$0xff] %vm290_vm1, %v287_v23  ;;  %521 = vst.msk [vmem:[%s664_s7 + $0x38] sm:$0xff] %vm290_vm1, %v358_v30 }
  0xf2   : > { %292 = vst.msk [vmem:[%s664_s7 + $0x8] sm:$0xff] %vm290_vm1, %v279_v27  ;;  %519 = vst.msk [vmem:[%s664_s7 + $0x28] sm:$0xff] %vm290_vm1, %v350_v32 }
  0xf4   : > { %v572_v33 = vpop.f32.mrb[4].mxu0 }
  0xf5   : > { %v426_v34 = vadd.f32 %v572_v33, %v201_v13  ;;  %v417_v35 = vpop.f32.mrb[5].mxu0 }
  0xf6   : > { %v418_v36 = vadd.f32 %v417_v35, %v191_v14  ;;  %v573_v37 = vpop.f32.mrb[6].mxu0 }
  0xf7   : > { %532 = vst.msk [vmem:[%s664_s7 + $0x50] sm:$0xff] %vm290_vm1, %v426_v34  ;;  %v429_v38 = vadd.f32 %v573_v37, %v206_v16  ;;  %v420_v39 = vpop.f32.mrb[7].mxu0 }
  0xf8   : > { %530 = vst.msk [vmem:[%s664_s7 + $0x40] sm:$0xff] %vm290_vm1, %v418_v36  ;;  %v421_v40 = vadd.f32 %v420_v39, %v196_v19 }
  0xf9   : > { %533 = vst.msk [vmem:[%s664_s7 + $0x58] sm:$0xff] %vm290_vm1, %v429_v38 }
  0xfa   : > { %531 = vst.msk [vmem:[%s664_s7 + $0x48] sm:$0xff] %vm290_vm1, %v421_v40 }
  0xfb PF: > { %s13_s12 = sadd.s32 1, %s599_s12  }
  0xfc   : > { %p10_p4 = scmp.ge.s32.totalorder %s13_s12, 4  }
  0xfe   :  { %12 = sbr.rel (!%p10_p4) target bundleno = 1 (0x1), region = 66 }

</bundles_post_ra>
